<compile_context>
chip_gen: v7x
topology: tpu7x:2x2x1
jax: 0.10.0
libtpu: 0.0.40
codegen_flags: <defaults>
</compile_context>

<pallas_src>
import functools

import jax
import jax.numpy as jnp
from jax.experimental import pallas as pl
from jax.experimental.pallas import tpu as pltpu


_INPUT_VMEM_BUDGET = 16 * 1024 * 1024   # bytes for 2 inputs x 2 pipeline buffers
_MAX_TILE_ROWS = 1024                   # keeps kernel-body temporaries comfy on all gens
_VMEM_LIMIT_BYTES = 48 * 1024 * 1024    # leaves headroom under v7x's 64 MiB physical VMEM


def _listnet_kernel(pred_ref, tgt_ref, out_ref, *, tau):
    # (tile_b, L) blocks: batch on sublanes, list dim L on lanes.
    # All softmax reductions are over the lane axis (axis=1).
    t = tgt_ref[...].astype(jnp.float32) * jnp.float32(tau)
    p = pred_ref[...].astype(jnp.float32)

    # softmax(tau * target) numerator / denominator (numerically stable).
    t_max = jnp.max(t, axis=1, keepdims=True)
    t_exp = jnp.exp(t - t_max)
    denom_t = jnp.sum(t_exp, axis=1, keepdims=True)                  # (tile_b, 1)

    # log_softmax(pred) pieces.
    p_max = jnp.max(p, axis=1, keepdims=True)
    p_shift = p - p_max
    log_denom_p = jnp.log(jnp.sum(jnp.exp(p_shift), axis=1, keepdims=True))

    # loss_row = -sum_j p1_j * log_p2_j
    #          = log_denom_p - sum_j(t_exp_j * p_shift_j) / denom_t
    # (uses sum_j p1_j == 1; avoids materializing p1 and the per-element div).
    dot = jnp.sum(t_exp * p_shift, axis=1, keepdims=True)            # (tile_b, 1)
    # approx=True would push this onto the EUP fast path (~1e-4 rel. error);
    # kept exact so the result matches the reference to 1e-5.
    inv_denom = pl.reciprocal(denom_t, approx=False)
    row_loss = log_denom_p - dot * inv_denom                         # (tile_b, 1)

    # Independent per-tile partial sum -> grid axis stays 'parallel'.
    out_ref[...] = jnp.sum(row_loss, keepdims=True)                  # (1, 1)


def _choose_tile_b(B, L, pred_itemsize, tgt_itemsize):
    """Largest batch tile that (a) divides B, (b) is a multiple of 8 (or == B),
    (c) keeps the double-buffered input streams under the VMEM budget."""
    bytes_per_row = 2 * L * (pred_itemsize + tgt_itemsize)   # 2 pipeline buffers each
    max_rows = max(8, _INPUT_VMEM_BUDGET // max(bytes_per_row, 1))
    cap = max(8, min(_MAX_TILE_ROWS, max_rows))
    if B <= cap:
        return B                         # single full-batch tile (full-dim block)
    t = cap - (cap % 8)
    while t >= 8:
        if B % t == 0:
            return t
        t -= 8
    return B                             # no aligned divisor <= cap; one big tile


def listnet_loss(pred, target, *, tau=1.0, reduction="mean", tile_b=None):
    """ListNet loss. pred/target: (B, L). Supports reduction='mean'/'sum'."""
    B, L = pred.shape
    assert target.shape == (B, L)
    if tile_b is None:
        tile_b = _choose_tile_b(B, L, jnp.dtype(pred.dtype).itemsize,
                                jnp.dtype(target.dtype).itemsize)
    assert B % tile_b == 0, "batch must be divisible by tile_b"
    assert tile_b % 8 == 0 or tile_b == B, "tile_b must be a multiple of 8 (or == B)"
    num_tiles = B // tile_b

    kernel = functools.partial(_listnet_kernel, tau=tau)
    partials = pl.pallas_call(
        kernel,
        out_shape=jax.ShapeDtypeStruct((num_tiles, 1), jnp.float32),
        grid_spec=pltpu.PrefetchScalarGridSpec(
            num_scalar_prefetch=0,
            grid=(num_tiles,),
            in_specs=[
                pl.BlockSpec((tile_b, L), lambda i: (i, 0)),
                pl.BlockSpec((tile_b, L), lambda i: (i, 0)),
            ],
            out_specs=pl.BlockSpec((1, 1), lambda i: (i, 0)),
        ),
        compiler_params=pltpu.CompilerParams(
            dimension_semantics=("parallel",),    # per-tile partials are independent
            vmem_limit_bytes=_VMEM_LIMIT_BYTES,
        ),
    )(pred, target)

    total = jnp.sum(partials)
    if reduction == "mean":
        return total / jnp.float32(B)
    if reduction == "sum":
        return total
    # TODO(synk): reduction='none' (per-row loss) would need a (B,)-shaped
    # per-row output instead of per-tile partial sums.
    raise NotImplementedError(f"reduction={reduction!r} not supported")


def _listnet_loss_ref(pred, target, tau=1.0):
    p1 = jax.nn.softmax(tau * target.astype(jnp.float32), axis=1)
    log_p2 = jax.nn.log_softmax(pred.astype(jnp.float32), axis=1)
    return (-(p1 * log_p2).sum(axis=1)).mean()


if __name__ == "__main__":
    key = jax.random.PRNGKey(0)
    k1, k2 = jax.random.split(key)

    B, L = 16, 32   # small list-ranking problem: 16 lists, 32 items each
    pred = jax.random.normal(k1, (B, L), dtype=jnp.float32)
    target = jax.random.normal(k2, (B, L), dtype=jnp.float32)

    ref = _listnet_loss_ref(pred, target, tau=1.0)

    # 1) default auto-sized tile (single full-batch tile at this size).
    out = jax.block_until_ready(listnet_loss(pred, target, tau=1.0))
    assert jnp.allclose(out, ref, rtol=1e-5, atol=1e-5), (out, ref)

    # 2) force multiple grid steps to exercise the per-tile partial-sum path.
    out_tiled = jax.block_until_ready(listnet_loss(pred, target, tau=1.0, tile_b=8))
    assert jnp.allclose(out_tiled, ref, rtol=1e-5, atol=1e-5), (out_tiled, ref)

    print("KERNEL_OK")
</pallas_src>

<mosaic_0001>
module attributes {stable_mosaic.version = 11 : i64} {
  func.func @_listnet_kernel(%arg0: i32, %arg1: memref<16x32xf32, #tpu.memory_space<vmem>>, %arg2: memref<16x32xf32, #tpu.memory_space<vmem>>, %arg3: memref<1x1xf32, #tpu.memory_space<vmem>>) attributes {dimension_semantics = [#tpu.dimension_semantics<parallel>], iteration_bounds = array<i64: 1>, scalar_prefetch = 0 : i64, scratch_operands = 0 : i64, tpu.core_type = #tpu.core_type<tc>, window_params = [{transform_indices = @transform_0, window_bounds = array<i64: 16, 32>}, {transform_indices = @transform_1, window_bounds = array<i64: 16, 32>}, {transform_indices = @transform_2, window_bounds = array<i64: 1, 1>}]} {
    %c0 = arith.constant 0 : index
    %c0_0 = arith.constant 0 : index
    %0 = vector.load %arg2[%c0, %c0_0] : memref<16x32xf32, #tpu.memory_space<vmem>>, vector<16x32xf32>
    %cst = arith.constant 1.000000e+00 : f32
    %1 = vector.broadcast %cst : f32 to vector<16x32xf32>
    %2 = arith.mulf %0, %1 : vector<16x32xf32>
    %c0_1 = arith.constant 0 : index
    %c0_2 = arith.constant 0 : index
    %3 = vector.load %arg1[%c0_1, %c0_2] : memref<16x32xf32, #tpu.memory_space<vmem>>, vector<16x32xf32>
    %cst_3 = arith.constant dense<0xFF800000> : vector<16xf32>
    %4 = vector.multi_reduction <maximumf>, %2, %cst_3 [1] : vector<16x32xf32> to vector<16xf32>
    %5 = vector.shape_cast %4 : vector<16xf32> to vector<16x1xf32>
    %6 = vector.broadcast %5 : vector<16x1xf32> to vector<16x32xf32>
    %7 = arith.subf %2, %6 : vector<16x32xf32>
    %8 = math.exp %7 : vector<16x32xf32>
    %cst_4 = arith.constant dense<0.000000e+00> : vector<16xf32>
    %9 = vector.multi_reduction <add>, %8, %cst_4 [1] : vector<16x32xf32> to vector<16xf32>
    %10 = vector.shape_cast %9 : vector<16xf32> to vector<16x1xf32>
    %cst_5 = arith.constant dense<0xFF800000> : vector<16xf32>
    %11 = vector.multi_reduction <maximumf>, %3, %cst_5 [1] : vector<16x32xf32> to vector<16xf32>
    %12 = vector.shape_cast %11 : vector<16xf32> to vector<16x1xf32>
    %13 = vector.broadcast %12 : vector<16x1xf32> to vector<16x32xf32>
    %14 = arith.subf %3, %13 : vector<16x32xf32>
    %15 = math.exp %14 : vector<16x32xf32>
    %cst_6 = arith.constant dense<0.000000e+00> : vector<16xf32>
    %16 = vector.multi_reduction <add>, %15, %cst_6 [1] : vector<16x32xf32> to vector<16xf32>
    %17 = vector.shape_cast %16 : vector<16xf32> to vector<16x1xf32>
    %18 = math.log %17 : vector<16x1xf32>
    %19 = arith.mulf %8, %14 : vector<16x32xf32>
    %cst_7 = arith.constant dense<0.000000e+00> : vector<16xf32>
    %20 = vector.multi_reduction <add>, %19, %cst_7 [1] : vector<16x32xf32> to vector<16xf32>
    %21 = vector.shape_cast %20 : vector<16xf32> to vector<16x1xf32>
    %22 = tpu.reciprocal %10 : vector<16x1xf32> -> vector<16x1xf32>
    %23 = arith.mulf %21, %22 : vector<16x1xf32>
    %24 = arith.subf %18, %23 : vector<16x1xf32>
    %25 = vector.shape_cast %24 : vector<16x1xf32> to vector<1x16x1xf32>
    %cst_8 = arith.constant dense<0.000000e+00> : vector<1xf32>
    %26 = vector.multi_reduction <add>, %25, %cst_8 [1, 2] : vector<1x16x1xf32> to vector<1xf32>
    %27 = vector.shape_cast %26 : vector<1xf32> to vector<1x1x1xf32>
    %28 = vector.extract %27[0, 0, 0] : f32 from vector<1x1x1xf32>
    %29 = vector.broadcast %28 : f32 to vector<1x1xf32>
    %c0_9 = arith.constant 0 : index
    %c0_10 = arith.constant 0 : index
    %30 = vector.load %arg3[%c0_9, %c0_10] : memref<1x1xf32, #tpu.memory_space<vmem>>, vector<1x1xf32>
    tpu.vector_store %arg3[%c0_9, %c0_10], %29 {strides = array<i32>} : memref<1x1xf32, #tpu.memory_space<vmem>>, vector<1x1xf32>,
    return
  }
  func.func @transform_0(%arg0: i32) -> (i32, i32) {
    %c0_i32 = arith.constant 0 : i32
    %c0_i32_0 = arith.constant 0 : i32
    return %arg0, %c0_i32 : i32, i32
  }
  func.func @transform_1(%arg0: i32) -> (i32, i32) {
    %c0_i32 = arith.constant 0 : i32
    %c0_i32_0 = arith.constant 0 : i32
    return %arg0, %c0_i32 : i32, i32
  }
  func.func @transform_2(%arg0: i32) -> (i32, i32) {
    %c0_i32 = arith.constant 0 : i32
    %c0_i32_0 = arith.constant 0 : i32
    return %arg0, %c0_i32 : i32, i32
  }
}

</mosaic_0001>

<bundles_post_ra>
// kernel: tpu_custom_call.1
= control target key start
LH: loop header
LB: loop body
LE: loop exit
PB: predicated region body
PF: predicated region fallthrough
CT: control target
= control target key end

     0   :  { %7 = vsyncpa [#allocation3], 0  ;;  %s292_s0 = inlined_call_operand.hbm [shape: f32[16,32], index: 0, kind: input, shape index: {}]   ;;  %s293_s1 = inlined_call_operand.hbm [shape: f32[16,32], index: 1, kind: input, shape index: {}]   ;;  %s294_s2 = inlined_call_operand.hbm [shape: f32[1,1], index: 2, kind: output, shape index: {}]  }
   0x1   :  { %8 = vsyncpa [#allocation6], 0 }
   0x2   :  { %9 = vsyncpa [#allocation4], 0  ;;  %s226_s9 = smov [#allocation2]   ;;  %s154_s13 = scalar_lea.hbm %s292_s0, 256 }
   0x3   :  { %s15_s10 = sshll.u32 %s226_s9, 4  ;;  %p155_p0 = scmp.ne.s32.totalorder %s292_s0, %s154_s13  ;;  %s16_s10 = int_to_ptr.vmem [resolvable:$true] %s15_s10 }
   0x4   :  { %p158_p1 = scmp.lt.u32.totalorder %s154_s13, %s292_s0 }
   0x6   :  { %p160_p2 = pnand %p158_p1, %p155_p0 }
   0x8   :  { %163 = shalt.err (!%p160_p2)
}
   0x9   :  { %s164_s18 = scalar_lea.vmem %s16_s10, 256  ;;  %p169_p4 = scmp.lt.s32.totalorder %s16_s10, %s16_s10 }
   0xa   :  { %p165_p3 = scmp.ne.s32.totalorder %s16_s10, %s164_s18  ;;  %p170_p5 = scmp.lt.s32.totalorder %s164_s18, %s164_s18 }
   0xc   :  { %p171_p6 = por %p170_p5, %p169_p4 }
   0xe   :  { %p172_p7 = pnand %p171_p6, %p165_p3 }
  0x10   :  { %175 = shalt.err (!%p172_p7)
}
  0x11   :  { %s227_s19 = smov 128   ;;  %s228_s20 = smov 8  }
  0x12   :  { %21 = dma.hbm_to_vmem [thread:$0]  %s292_s0, 256, %s16_s10, [#allocation3], %s227_s19, %s227_s19, %s228_s20  }
  0x13   :  { %s229_s23 = smov [#allocation5]   ;;  %s176_s27 = scalar_lea.hbm %s293_s1, 256 }
  0x14   :  { %s27_s24 = sshll.u32 %s229_s23, 4  ;;  %p177_p8 = scmp.ne.s32.totalorder %s293_s1, %s176_s27  ;;  %s28_s24 = int_to_ptr.vmem [resolvable:$true] %s27_s24 }
  0x15   :  { %p180_p9 = scmp.lt.u32.totalorder %s176_s27, %s293_s1 }
  0x17   :  { %p182_p10 = pnand %p180_p9, %p177_p8 }
  0x19   :  { %185 = shalt.err (!%p182_p10)
}
  0x1a   :  { %s186_s4 = scalar_lea.vmem %s28_s24, 256  ;;  %p191_p12 = scmp.lt.s32.totalorder %s28_s24, %s28_s24 }
  0x1b   :  { %p187_p11 = scmp.ne.s32.totalorder %s28_s24, %s186_s4  ;;  %p192_p13 = scmp.lt.s32.totalorder %s186_s4, %s186_s4 }
  0x1d   :  { %p193_p0 = por %p192_p13, %p191_p12 }
  0x1f   :  { %p194_p1 = pnand %p193_p0, %p187_p11 }
  0x21   :  { %197 = shalt.err (!%p194_p1)
}
  0x22   :  { %33 = dma.hbm_to_vmem [thread:$0]  %s293_s1, 256, %s28_s24, [#allocation6], %s227_s19, %s227_s19, %s228_s20  }
  0x23   :  { %220 = dma.done.wait [#allocation3], 256  }
  0x24   :  { %221 = vsyncadd [#allocation3], 4294967040 }
  0x25   :  { %222 = dma.done.wait [#allocation6], 256  }
  0x26   :  { %223 = vsyncadd [#allocation6], 4294967040  ;;  %vm44_vm0 = vcmask 261120   ;;  %v40_v0 = vld [vmem:[#allocation5] sm:$0xff]  ;;  %v42_v1 = vld [vmem:[#allocation2] sm:$0xff]  ;;  %vm99_vm1 = vcmask 7168  }
  0x27   :  { %v41_v2 = vld [vmem:[#allocation5 + $0x8] sm:$0xff]  ;;  %v45_v3 = vsel %vm44_vm0, %v40_v0, -inf  ;;  %v63_v4 = vsel %vm44_vm0, %v42_v1, -inf  ;;  %v43_v5 = vld [vmem:[#allocation2 + $0x8] sm:$0xff]  ;;  %s230_s1 = smov [#allocation7]   ;;  %vm113_vm2 = vcmask 0  }
  0x28   :  { %46 = vmax.xlane.f32.xlu0 %v45_v3  ;;  %64 = vmax.xlane.f32.xlu1 %v63_v4  ;;  %v48_v6 = vsel %vm44_vm0, %v41_v2, -inf  ;;  %v66_v7 = vsel %vm44_vm0, %v43_v5, -inf  ;;  %s121_s6 = sshll.u32 %s230_s1, 4  ;;  %s122_s6 = int_to_ptr.vmem [resolvable:$true] %s121_s6 }
  0x29   :  { %s198_s8 = scalar_lea.vmem %s122_s6, 16  ;;  %s202_s9 = scalar_lea.vmem %s122_s6, 32 }
  0x2a   :  { %p199_p2 = scmp.ne.s32.totalorder %s122_s6, %s198_s8  ;;  %p203_p3 = scmp.lt.s32.totalorder %s122_s6, %s122_s6 }
  0x2b   :  { %p204_p4 = scmp.lt.s32.totalorder %s202_s9, %s198_s8 }
  0x2c   :  { %49 = vmax.xlane.f32.xlu0 %v48_v6  ;;  %67 = vmax.xlane.f32.xlu1 %v66_v7 }
  0x2d   :  { %p205_p5 = por %p204_p4, %p203_p3 }
  0x2f   :  { %p206_p6 = pnand %p205_p5, %p199_p2 }
  0xb5   :  { %v47_v8 = vpop.xlane.xlu0 %46  ;;  %v65_v9 = vpop.xlane.xlu1 %64 }
  0xb6   :  { %v51_v10 = vsub.f32 %v40_v0, %v47_v8  ;;  %v69_v11 = vsub.f32 %v42_v1, %v65_v9 }
  0xb8   :  { %v53_v12 = vmul.f32 1.442695, %v51_v10  ;;  %v71_v13 = vmul.f32 1.442695, %v69_v11 }
  0xb9   :  { %v50_v14 = vpop.xlane.xlu0 %49  ;;  %v68_v15 = vpop.xlane.xlu1 %67 }
  0xba   :  { %138 = vpow2.f32 %v53_v12  ;;  %v52_v16 = vsub.f32 %v41_v2, %v50_v14  ;;  %v70_v17 = vsub.f32 %v43_v5, %v68_v15 }
  0xbb   :  { %140 = vpow2.f32 %v71_v13 }
  0xbc   :  { %v55_v18 = vmul.f32 1.442695, %v52_v16  ;;  %v73_v19 = vmul.f32 1.442695, %v70_v17 }
  0xbe   :  { %142 = vpow2.f32 %v55_v18 }
  0xbf   :  { %144 = vpow2.f32 %v73_v19 }
  0xc4   :  { %v139_v20 = vpop.eup %138 }
  0xc5   :  { %v141_v21 = vpop.eup %140  ;;  %v57_v22 = vsel %vm44_vm0, %v139_v20, 0.0  ;;  %v85_v27 = vmul.f32 %v139_v20, %v69_v11 }
  0xc6   :  { %58 = vadd.xlane.f32.xlu0 %v57_v22  ;;  %v75_v23 = vsel %vm44_vm0, %v141_v21, 0.0 }
  0xc7   :  { %v87_v29 = vsel %vm44_vm0, %v85_v27, 0.0 }
  0xc8   :  { %v143_v24 = vpop.eup %142 }
  0xc9   :  { %v145_v25 = vpop.eup %144  ;;  %v60_v26 = vsel %vm44_vm0, %v143_v24, 0.0  ;;  %v86_v30 = vmul.f32 %v143_v24, %v70_v17 }
  0xca   :  { %76 = vadd.xlane.f32.xlu0 %v75_v23  ;;  %61 = vadd.xlane.f32.xlu1 %v60_v26  ;;  %v78_v28 = vsel %vm44_vm0, %v145_v25, 0.0 }
  0xcb   :  { %v90_v31 = vsel %vm44_vm0, %v86_v30, 0.0 }
  0xce   :  { %88 = vadd.xlane.f32.xlu0 %v87_v29  ;;  %79 = vadd.xlane.f32.xlu1 %v78_v28 }
  0xd2   :  { %91 = vadd.xlane.f32.xlu1 %v90_v31 }
 0x153   :  { %v59_v32 = vpop.xlane.xlu0 %58 }
 0x154   :  { %146 = vrcp.f32 %v59_v32 }
 0x157   :  { %v62_v33 = vpop.xlane.xlu1 %61  ;;  %v77_v34 = vpop.xlane.xlu0 %76 }
 0x158   :  { %148 = vlog2.f32 %v77_v34 }
 0x159   :  { %150 = vrcp.f32 %v62_v33 }
 0x15b   :  { %v80_v35 = vpop.xlane.xlu1 %79  ;;  %v89_v40 = vpop.xlane.xlu0 %88 }
 0x15c   :  { %152 = vlog2.f32 %v80_v35 }
 0x15e   :  { %v147_v36 = vpop.eup %146 }
 0x15f   :  { %v95_v41 = vmul.f32 %v147_v36, %v89_v40  ;;  %v92_v43 = vpop.xlane.xlu1 %91 }
 0x162   :  { %v149_v37 = vpop.eup %148 }
 0x163   :  { %v151_v38 = vpop.eup %150  ;;  %v82_v39 = vmul.f32 0.6931472, %v149_v37 }
 0x164   :  { %v96_v46 = vmul.f32 %v151_v38, %v92_v43 }
 0x165   :  { %v97_v45 = vsub.f32 %v82_v39, %v95_v41 }
 0x166   :  { %v153_v42 = vpop.eup %152 }
 0x167   :  { %v84_v44 = vmul.f32 0.6931472, %v153_v42  ;;  %v100_v48 = vsel %vm99_vm1, %v97_v45, 0.0 }
 0x169   :  { %v98_v47 = vsub.f32 %v84_v44, %v96_v46 }
 0x16b   :  { %v101_v49 = vsel %vm99_vm1, %v98_v47, 0.0 }
 0x16c   :  { %v102_v50 = vadd.f32 %v101_v49, %v100_v48 }
 0x16e   :  { %103 = vadd.xlane.f32.xlu0 %v102_v50 }
 0x1fb   :  { %v104_v51 = vpop.xlane.xlu0 %103 }
 0x1fc   :  { %v105_v52 = vrot.slane %v104_v51, 4 }
 0x1fe   :  { %v106_v53 = vadd.f32 %v105_v52, %v104_v51 }
 0x200   :  { %v107_v54 = vrot.slane %v106_v53, 2 }
 0x202   :  { %v108_v55 = vadd.f32 %v107_v54, %v106_v53 }
 0x204   :  { %v109_v56 = vrot.slane %v108_v55, 1 }
 0x206   :  { %v110_v57 = vadd.f32 %v109_v56, %v108_v55 }
 0x208   :  { %131 = vpush %v110_v57 }
 0x239   :  { %s132_s7 = spop %131 }
 0x23a   :  { %v112_v58 = vstv %s132_s7 }
 0x23b   :  { %114 = vst.msk [vmem:[#allocation7] sm:$0x1] %vm113_vm2, %v112_v58 }
 0x23c   :  { %209 = shalt.err (!%p206_p6)
}
 0x23d   :  { %s210_s12 = scalar_lea.hbm %s294_s2, 16 }
 0x23e   :  { %p211_p7 = scmp.ne.s32.totalorder %s294_s2, %s210_s12  ;;  %p214_p8 = scmp.lt.u32.totalorder %s210_s12, %s294_s2 }
 0x240   :  { %p216_p9 = pnand %p214_p8, %p211_p7 }
 0x242   :  { %219 = shalt.err (!%p216_p9)
}
 0x243   :  { %124 = dma.vmem_to_hbm [thread:$0]  %s122_s6, 16, %s294_s2, [#allocation4]  }
 0x244   :  { %224 = dma.done.wait [#allocation4], 16  }
 0x245   :  { %225 = vsyncadd [#allocation4], 4294967280 }
 0x246   :  { %128 = vsyncpa [#allocation3], 1 }
 0x247   :  { %129 = vsyncpa [#allocation6], 1 }
 0x248   :  { %130 = vsyncpa [#allocation4], 1 }

</bundles_post_ra>
